<compile_context>
chip_gen: v6e
topology: v6e:2x2x1
jax: 0.10.0
libtpu: 0.0.40
codegen_flags: <defaults>
</compile_context>

<pallas_src>
import jax
import jax.numpy as jnp
from jax.experimental import pallas as pl
from jax.experimental.pallas import tpu as pltpu


# ---------------------------------------------------------------------------
# Config (mirrors Config_Model fields used by FeedForward)
# ---------------------------------------------------------------------------
DIM = 128                  # config.dim  (small, TPU-lane friendly)
MULTIPLE_OF = 256          # config.multiple_of
FFN_DIM_MULTIPLIER = None  # config.ffn_dim_multiplier


def compute_hidden_dim(dim, multiple_of, ffn_dim_multiplier):
    hidden_dim = 4 * dim
    hidden_dim = int(2 * hidden_dim / 3)
    if ffn_dim_multiplier is not None:
        hidden_dim = int(ffn_dim_multiplier * hidden_dim)
    hidden_dim = multiple_of * ((hidden_dim + multiple_of - 1) // multiple_of)
    return hidden_dim


HIDDEN_DIM = compute_hidden_dim(DIM, MULTIPLE_OF, FFN_DIM_MULTIPLIER)  # -> 512


# ---------------------------------------------------------------------------
# Pallas kernel: fused SwiGLU FFN over a tile of tokens
# ---------------------------------------------------------------------------
def ffn_kernel(x_ref, w13_ref, w2t_ref, o_ref):
    hidden = w2t_ref.shape[0]

    # x arrives in its native dtype; cast to bf16 here (no separate XLA pass
    # restreaming the activation through HBM in the wrapper).
    x = x_ref[...].astype(jnp.bfloat16)          # (tm, dim)
    w13 = w13_ref[...]                           # (dim, 2*hidden) bf16, resident

    # One MXU pass produces both the gate (w1) and value (w3) projections.
    h = jnp.dot(x, w13, preferred_element_type=jnp.float32)   # (tm, 2*hidden) f32
    h1 = h[:, :hidden]    # lane-aligned static slices (hidden % 128 == 0)
    h3 = h[:, hidden:]

    # silu(h1) * h3 in f32 (sigmoid goes to the EUP); single downcast to bf16
    # so the w2 matmul runs as a bf16 MXU op and its VMEM operand is half-size.
    # (Kept f32 so the same kernel is optimal on v5e, which has no bf16 VPU/EUP;
    #  elementwise is not the binding slot at these shapes anyway.)
    gated = (h1 * jax.nn.sigmoid(h1) * h3).astype(jnp.bfloat16)

    out = jnp.dot(gated, w2t_ref[...], preferred_element_type=jnp.float32)
    o_ref[...] = out.astype(o_ref.dtype)


# ---------------------------------------------------------------------------
# Wrapper
# ---------------------------------------------------------------------------
def _round_up(n, m):
    return ((n + m - 1) // m) * m


def _choose_tm(tokens):
    # tm is always a multiple of 16 (bf16 vregs pack [16,128]).
    if tokens <= 256:
        # One grid step: splitting an overhead-bound problem across steps (or
        # across v7x's two TensorCores) just multiplies the ~0.35 us/step fixed
        # cost and duplicates the resident weight footprint.
        return max(16, _round_up(tokens, 16))
    if tokens < 1024:
        # >= 2 full MXU-M-sized tiles exist: keep tm=256 so the "parallel"
        # token axis can shard across v7x's two TensorCores.
        return 256
    # Large token counts: the kernel is DMA/step-overhead bound at dim=128,
    # hidden=512, so bigger tiles amortize per-step cost. x tile is only
    # tm*dim*4 B (256 KiB at tm=512) -> VMEM is nowhere near the limit.
    return 512


def feed_forward(x, w13_t, w2_t, *, tm=None, out_dtype=jnp.bfloat16):
    """x: (tokens, dim); w13_t: (dim, 2*hidden) bf16; w2_t: (hidden, dim) bf16."""
    tokens, dim = x.shape
    two_hidden = w13_t.shape[1]
    hidden = two_hidden // 2
    assert w2_t.shape == (hidden, dim)

    if tm is None:
        tm = _choose_tm(tokens)

    # Ragged last block handled by Pallas (writes past `tokens` are masked;
    # garbage rows read in the partial block are harmless since the FFN is
    # purely row-wise). No wrapper-side pad/astype passes.
    grid = (pl.cdiv(tokens, tm),)

    # NOTE: the weight BlockSpecs use a constant index_map, so Pallas keeps the
    # same VMEM block across grid steps and does not re-issue weight DMAs.
    # At these demo sizes the full weights (~0.4 MiB bf16) trivially fit VMEM;
    # if VMEM ever gets tight after enlarging tm, mark the two weight specs
    # with pipeline_mode=pl.Buffered(1) (their blocks never change, so default
    # double-buffering only wastes VMEM).
    #
    # TODO(synk): production dims (e.g. dim=4096, hidden=14336) need a hidden-
    # axis grid dimension (last, "arbitrary") with an f32 (tm, dim) accumulator
    # scratch and pl.when init/finalize. v7x budget (64 MiB VMEM): tm=256,
    # hidden tile th=512 -> w13 block 8 MiB + w2 block 4 MiB, double-buffered
    # = 24 MiB, plus x/out/acc/h ~ 8-10 MiB => ~33 MiB (raise vmem_limit_bytes
    # to ~44-48 MiB). On v5e/v6e (128 MiB physical) raise the scoped limit to
    # ~100 MiB and take th=1024 to halve the reduction steps; keep tiles at
    # multiples of 256 so both matmul K and N fill the 256-wide MXU on v6e/v7x.
    out = pl.pallas_call(
        ffn_kernel,
        out_shape=jax.ShapeDtypeStruct((tokens, dim), out_dtype),
        grid_spec=pltpu.PrefetchScalarGridSpec(
            num_scalar_prefetch=0,
            grid=grid,
            in_specs=[
                pl.BlockSpec((tm, dim), lambda i: (i, 0)),          # x tile
                pl.BlockSpec((dim, two_hidden), lambda i: (0, 0)),  # fused w1/w3 (resident)
                pl.BlockSpec((hidden, dim), lambda i: (0, 0)),      # w2^T (resident)
            ],
            out_specs=pl.BlockSpec((tm, dim), lambda i: (i, 0)),
        ),
        compiler_params=pltpu.CompilerParams(
            dimension_semantics=("parallel",),      # token axis: megacore-shardable
            vmem_limit_bytes=32 * 1024 * 1024,      # safe on v5e/v6e/v7x
        ),
    )(x, w13_t, w2_t)

    return out


# ---------------------------------------------------------------------------
# Main
# ---------------------------------------------------------------------------
if __name__ == "__main__":
    key = jax.random.PRNGKey(0)
    k_x, k1, k2, k3 = jax.random.split(key, 4)

    batch, seq = 2, 8
    x = jax.random.normal(k_x, (batch, seq, DIM), dtype=jnp.float32)

    # Deterministic param init (PyTorch Linear weight shapes: (out, in)).
    scale1 = 1.0 / (DIM ** 0.5)
    scale2 = 1.0 / (HIDDEN_DIM ** 0.5)
    w1 = jax.random.uniform(k1, (HIDDEN_DIM, DIM), jnp.float32, -scale1, scale1)
    w2 = jax.random.uniform(k2, (DIM, HIDDEN_DIM), jnp.float32, -scale2, scale2)
    w3 = jax.random.uniform(k3, (HIDDEN_DIM, DIM), jnp.float32, -scale1, scale1)

    # Pre-pack weights for the kernel: transposed, w1/w3 fused, bf16.
    w13_t = jnp.concatenate([w1.T, w3.T], axis=1).astype(jnp.bfloat16)  # (dim, 2*hidden)
    w2_t = w2.T.astype(jnp.bfloat16)                                    # (hidden, dim)

    # Flatten (B, S, D) -> (B*S, D) for the kernel, reshape back after.
    x2d = x.reshape(batch * seq, DIM)
    out2d = feed_forward(x2d, w13_t, w2_t)          # bf16 out, single grid step
    out = out2d.reshape(batch, seq, DIM)
    jax.block_until_ready(out)

    # Reference with the same bf16 operand rounding as the kernel.
    xb = x2d.astype(jnp.bfloat16).astype(jnp.float32)
    w13f = w13_t.astype(jnp.float32)
    w2f = w2_t.astype(jnp.float32)
    h = xb @ w13f
    h1, h3 = h[:, :HIDDEN_DIM], h[:, HIDDEN_DIM:]
    gated = (jax.nn.silu(h1) * h3).astype(jnp.bfloat16).astype(jnp.float32)
    ref = gated @ w2f

    assert jnp.allclose(out2d.astype(jnp.float32), ref, atol=3e-2, rtol=3e-2)

    print("KERNEL_OK")
</pallas_src>

<mosaic_0001>
module attributes {stable_mosaic.version = 11 : i64} {
  func.func @ffn_kernel(%arg0: i32, %arg1: memref<16x128xf32, #tpu.memory_space<vmem>>, %arg2: memref<128x1024xbf16, #tpu.memory_space<vmem>>, %arg3: memref<512x128xbf16, #tpu.memory_space<vmem>>, %arg4: memref<16x128xbf16, #tpu.memory_space<vmem>>) attributes {dimension_semantics = [#tpu.dimension_semantics<parallel>], iteration_bounds = array<i64: 1>, scalar_prefetch = 0 : i64, scratch_operands = 0 : i64, tpu.core_type = #tpu.core_type<tc>, window_params = [{transform_indices = @transform_0, window_bounds = array<i64: 16, 128>}, {pipeline_mode = #tpu.pipeline_mode<synchronous>, transform_indices = @transform_1, window_bounds = array<i64: 128, 1024>}, {pipeline_mode = #tpu.pipeline_mode<synchronous>, transform_indices = @transform_2, window_bounds = array<i64: 512, 128>}, {transform_indices = @transform_3, window_bounds = array<i64: 16, 128>}]} {
    %c0 = arith.constant 0 : index
    %c0_0 = arith.constant 0 : index
    %0 = vector.load %arg1[%c0, %c0_0] : memref<16x128xf32, #tpu.memory_space<vmem>>, vector<16x128xf32>
    %1 = arith.truncf %0 : vector<16x128xf32> to vector<16x128xbf16>
    %c0_1 = arith.constant 0 : index
    %c0_2 = arith.constant 0 : index
    %2 = vector.load %arg2[%c0_1, %c0_2] : memref<128x1024xbf16, #tpu.memory_space<vmem>>, vector<128x1024xbf16>
    %cst = arith.constant dense<0.000000e+00> : vector<16x1024xf32>
    %3 = tpu.matmul %1, %2, %cst {dimension_numbers = #tpu.dot_dimension_numbers<[1], [0], [0], [1], [0, 0, 1, 1], [], []>} : vector<16x128xbf16>, vector<128x1024xbf16>, vector<16x1024xf32> -> vector<16x1024xf32>
    %4 = vector.extract_strided_slice %3 {offsets = [0, 0], sizes = [16, 512], strides = [1, 1]} : vector<16x1024xf32> to vector<16x512xf32>
    %5 = vector.extract_strided_slice %3 {offsets = [0, 512], sizes = [16, 512], strides = [1, 1]} : vector<16x1024xf32> to vector<16x512xf32>
    %6 = arith.negf %4 : vector<16x512xf32>
    %7 = math.exp %6 : vector<16x512xf32>
    %cst_3 = arith.constant 1.000000e+00 : f32
    %8 = vector.broadcast %cst_3 : f32 to vector<16x512xf32>
    %9 = arith.addf %8, %7 : vector<16x512xf32>
    %10 = arith.divf %8, %9 : vector<16x512xf32>
    %11 = arith.mulf %4, %10 : vector<16x512xf32>
    %12 = arith.mulf %11, %5 : vector<16x512xf32>
    %13 = arith.truncf %12 : vector<16x512xf32> to vector<16x512xbf16>
    %c0_4 = arith.constant 0 : index
    %c0_5 = arith.constant 0 : index
    %14 = vector.load %arg3[%c0_4, %c0_5] : memref<512x128xbf16, #tpu.memory_space<vmem>>, vector<512x128xbf16>
    %cst_6 = arith.constant dense<0.000000e+00> : vector<16x128xf32>
    %15 = tpu.matmul %13, %14, %cst_6 {dimension_numbers = #tpu.dot_dimension_numbers<[1], [0], [0], [1], [0, 0, 1, 1], [], []>} : vector<16x512xbf16>, vector<512x128xbf16>, vector<16x128xf32> -> vector<16x128xf32>
    %16 = arith.truncf %15 : vector<16x128xf32> to vector<16x128xbf16>
    %c0_7 = arith.constant 0 : index
    %c0_8 = arith.constant 0 : index
    %17 = vector.load %arg4[%c0_7, %c0_8] : memref<16x128xbf16, #tpu.memory_space<vmem>>, vector<16x128xbf16>
    tpu.vector_store %arg4[%c0_7, %c0_8], %16 {strides = array<i32>} : memref<16x128xbf16, #tpu.memory_space<vmem>>, vector<16x128xbf16>,
    return
  }
  func.func @transform_0(%arg0: i32) -> (i32, i32) {
    %c0_i32 = arith.constant 0 : i32
    %c0_i32_0 = arith.constant 0 : i32
    return %arg0, %c0_i32 : i32, i32
  }
  func.func @transform_1(%arg0: i32) -> (i32, i32) {
    %c0_i32 = arith.constant 0 : i32
    %c0_i32_0 = arith.constant 0 : i32
    %c0_i32_1 = arith.constant 0 : i32
    return %c0_i32, %c0_i32_0 : i32, i32
  }
  func.func @transform_2(%arg0: i32) -> (i32, i32) {
    %c0_i32 = arith.constant 0 : i32
    %c0_i32_0 = arith.constant 0 : i32
    %c0_i32_1 = arith.constant 0 : i32
    return %c0_i32, %c0_i32_0 : i32, i32
  }
  func.func @transform_3(%arg0: i32) -> (i32, i32) {
    %c0_i32 = arith.constant 0 : i32
    %c0_i32_0 = arith.constant 0 : i32
    return %arg0, %c0_i32 : i32, i32
  }
}

</mosaic_0001>

<bundles_post_ra>
// kernel: tpu_custom_call.1
= control target key start
LH: loop header
LB: loop body
LE: loop exit
PB: predicated region body
PF: predicated region fallthrough
CT: control target
= control target key end

     0   :  { %8 = vsyncpa [#allocation3], 0  ;;  %s1435_s0 = inlined_call_operand.hbm [shape: f32[16,128], index: 0, kind: input, shape index: {}]   ;;  %s1436_s1 = inlined_call_operand.hbm [shape: bf16[128,1024], index: 1, kind: input, shape index: {}]   ;;  %s1437_s2 = inlined_call_operand.hbm [shape: bf16[512,128], index: 2, kind: input, shape index: {}]   ;;  %s1438_s3 = inlined_call_operand.hbm [shape: bf16[16,128], index: 3, kind: output, shape index: {}]  }
   0x1   :  { %9 = vsyncpa [#allocation6], 0 }
   0x2   :  { %10 = vsyncpa [#allocation4], 0  ;;  %s1368_s12 = smov [#allocation5]  }
   0x3   :  { %s28_s13 = sshll.u32 %s1368_s12, 4  ;;  %s29_s13 = int_to_ptr.vmem [resolvable:$true] %s28_s13 }
   0x4   :  { %s1290_s14 = scalar_lea.vmem %s29_s13, 8192  ;;  %p1295_p1 = scmp.lt.s32.totalorder %s29_s13, %s29_s13 }
   0x5   :  { %p1291_p0 = scmp.ne.s32.totalorder %s29_s13, %s1290_s14  ;;  %p1296_p2 = scmp.lt.s32.totalorder %s1290_s14, %s1290_s14 }
   0x7   :  { %p1297_p3 = por %p1296_p2, %p1295_p1 }
   0x9   :  { %p1298_p4 = pnand %p1297_p3, %p1291_p0 }
   0xb   :  { %1301 = shalt.err (!%p1298_p4)
}
   0xc   :  { %s1369_s15 = smov 512   ;;  %s1370_s16 = smov 32  }
   0xd   :  { %34 = dma.hbm_to_vmem [thread:$0]  %s1436_s1, 8192, %s29_s13, [#allocation6], %s1369_s15, %s1369_s15, %s1370_s16  }
   0xe   :  { %s1371_s19 = smov [#allocation2]  }
   0xf   :  { %s16_s20 = sshll.u32 %s1371_s19, 4  ;;  %s17_s20 = int_to_ptr.vmem [resolvable:$true] %s16_s20 }
  0x10   :  { %s1310_s21 = scalar_lea.vmem %s17_s20, 256  ;;  %p1315_p6 = scmp.lt.s32.totalorder %s17_s20, %s17_s20 }
  0x11   :  { %p1311_p5 = scmp.ne.s32.totalorder %s17_s20, %s1310_s21  ;;  %p1316_p7 = scmp.lt.s32.totalorder %s1310_s21, %s1310_s21 }
  0x13   :  { %p1317_p8 = por %p1316_p7, %p1315_p6 }
  0x15   :  { %p1318_p9 = pnand %p1317_p8, %p1311_p5 }
  0x17   :  { %1321 = shalt.err (!%p1318_p9)
}
  0x18   :  { %s1372_s22 = smov 128   ;;  %s1373_s23 = smov 8  }
  0x19   :  { %22 = dma.hbm_to_vmem [thread:$0]  %s1435_s0, 256, %s17_s20, [#allocation3], %s1372_s22, %s1372_s22, %s1373_s23  }
  0x1a   :  { %s1374_s26 = smov [#allocation7]  }
  0x1b   :  { %s40_s27 = sshll.u32 %s1374_s26, 4  ;;  %s41_s27 = int_to_ptr.vmem [resolvable:$true] %s40_s27 }
  0x1c   :  { %s1330_s1 = scalar_lea.vmem %s41_s27, 4096  ;;  %p1335_p11 = scmp.lt.s32.totalorder %s41_s27, %s41_s27 }
  0x1d   :  { %p1331_p10 = scmp.ne.s32.totalorder %s41_s27, %s1330_s1  ;;  %p1336_p12 = scmp.lt.s32.totalorder %s1330_s1, %s1330_s1 }
  0x1f   :  { %p1337_p13 = por %p1336_p12, %p1335_p11 }
  0x21   :  { %p1338_p0 = pnand %p1337_p13, %p1331_p10 }
  0x23   :  { %1341 = shalt.err (!%p1338_p0)
}
  0x24   :  { %s1375_s28 = smov 64   ;;  %s1376_s29 = smov 4  }
  0x25   :  { %46 = dma.hbm_to_vmem [thread:$0]  %s1437_s2, 4096, %s41_s27, [#allocation6], %s1375_s28, %s1375_s28, %s1376_s29  }
  0x26   :  { %1362 = dma.done.wait [#allocation3], 256  }
  0x27   :  { %1363 = vsyncadd [#allocation3], 4294967040 }
  0x28   :  { %1364 = dma.done.wait [#allocation6], 12288  }
  0x29   :  { %1365 = vsyncadd [#allocation6], 4294955008  ;;  %v1377_v0 = vmov 0   ;;  %v116_v1 = vld [vmem:[#allocation5 + $0x1c0] sm:$0xff]  ;;  %v117_v3 = vld [vmem:[#allocation5 + $0x1c8] sm:$0xff]  ;;  %s1378_s0 = smov [#allocation8]  }
  0x2a   :  { %476 = vmatprep.mubr.bf16.mxu0 %v1377_v0  ;;  %519 = vmatprep.mubr.bf16.mxu1 %v1377_v0  ;;  %v120_v2 = vld [vmem:[#allocation5 + $0x1e0] sm:$0xff]  ;;  %v121_v5 = vld [vmem:[#allocation5 + $0x1e8] sm:$0xff]  ;;  %v118_v60 = vld [vmem:[#allocation5 + $0x1d0] sm:$0xff]  ;;  %s1037_s2 = sshll.u32 %s1378_s0, 4  ;;  %s1038_s2 = int_to_ptr.vmem [resolvable:$true] %s1037_s2 }
  0x2b   :  { %v1107_v4 = vcombine.high %v116_v1, %v120_v2  ;;  %v1106_v6 = vcombine.low %v116_v1, %v120_v2  ;;  %v108_v7 = vld [vmem:[#allocation5 + $0x180] sm:$0xff]  ;;  %v1109_v9 = vcombine.high %v117_v3, %v121_v5  ;;  %v1108_v10 = vcombine.low %v117_v3, %v121_v5  ;;  %v109_v12 = vld [vmem:[#allocation5 + $0x188] sm:$0xff]  ;;  %v122_v61 = vld [vmem:[#allocation5 + $0x1f0] sm:$0xff]  ;;  %s1342_s5 = scalar_lea.vmem %s1038_s2, 128  ;;  %p1347_p2 = scmp.lt.s32.totalorder %s1038_s2, %s1038_s2 }
  0x2c   :  { %v112_v8 = vld [vmem:[#allocation5 + $0x1a0] sm:$0xff]  ;;  %v113_v13 = vld [vmem:[#allocation5 + $0x1a8] sm:$0xff]  ;;  %v119_v1 = vld [vmem:[#allocation5 + $0x1d8] sm:$0xff]  ;;  %p1343_p1 = scmp.ne.s32.totalorder %s1038_s2, %s1342_s5  ;;  %p1348_p3 = scmp.lt.s32.totalorder %s1342_s5, %s1342_s5 }
  0x2d   :  { %v1099_v11 = vcombine.high %v108_v7, %v112_v8  ;;  %v100_v14 = vld [vmem:[#allocation5 + $0x140] sm:$0xff]  ;;  %444 = vmatprep.subr.bf16.mxu0 %v1107_v4  ;;  %v1101_v15 = vcombine.high %v109_v12, %v113_v13  ;;  %v101_v17 = vld [vmem:[#allocation5 + $0x148] sm:$0xff]  ;;  %487 = vmatprep.subr.bf16.mxu1 %v1109_v9  ;;  %v1098_v19 = vcombine.low %v108_v7, %v112_v8  ;;  %v123_v2 = vld [vmem:[#allocation5 + $0x1f8] sm:$0xff] }
  0x2e   :  { %v104_v16 = vld [vmem:[#allocation5 + $0x160] sm:$0xff]  ;;  %v105_v18 = vld [vmem:[#allocation5 + $0x168] sm:$0xff]  ;;  %445 = vmatpush1.bf16.msra.mxu0 %v1106_v6  ;;  %488 = vmatpush1.bf16.msra.mxu1 %v1108_v10  ;;  %v1100_v20 = vcombine.low %v109_v12, %v113_v13  ;;  %v57_v4 = vld [vmem:[#allocation2] sm:$0xff]  ;;  %v1111_v10 = vcombine.high %v118_v60, %v122_v61  ;;  %v1113_v13 = vcombine.high %v119_v1, %v123_v2  ;;  %p1349_p4 = por %p1348_p3, %p1347_p2 }
  0x2f   :  { %446 = vmatprep.subr.bf16.mxu0 %v1099_v11  ;;  %v1091_v21 = vcombine.high %v100_v14, %v104_v16  ;;  %489 = vmatprep.subr.bf16.mxu1 %v1101_v15  ;;  %v1093_v22 = vcombine.high %v101_v17, %v105_v18  ;;  %v92_v23 = vld [vmem:[#allocation5 + $0x100] sm:$0xff]  ;;  %v93_v25 = vld [vmem:[#allocation5 + $0x108] sm:$0xff]  ;;  %v1090_v27 = vcombine.low %v100_v14, %v104_v16  ;;  %v58_v5 = vld [vmem:[#allocation2 + $0x8] sm:$0xff] }
  0x30   :  { %v96_v24 = vld [vmem:[#allocation5 + $0x120] sm:$0xff]  ;;  %v97_v26 = vld [vmem:[#allocation5 + $0x128] sm:$0xff]  ;;  %v1092_v28 = vcombine.low %v101_v17, %v105_v18  ;;  %v110_v7 = vld [vmem:[#allocation5 + $0x190] sm:$0xff]  ;;  %v1413_v14 = vpack.c.bf16 %v58_v5, %v57_v4  ;;  %v1110_v15 = vcombine.low %v118_v60, %v122_v61  ;;  %v1112_v18 = vcombine.low %v119_v1, %v123_v2  ;;  %p1350_p5 = pnand %p1349_p4, %p1343_p1 }
  0x31   :  { %v1083_v29 = vcombine.high %v92_v23, %v96_v24  ;;  %v1085_v30 = vcombine.high %v93_v25, %v97_v26  ;;  %v84_v31 = vld [vmem:[#allocation5 + $0xc0] sm:$0xff]  ;;  %v85_v33 = vld [vmem:[#allocation5 + $0xc8] sm:$0xff]  ;;  %v1082_v35 = vcombine.low %v92_v23, %v96_v24  ;;  %v1084_v36 = vcombine.low %v93_v25, %v97_v26  ;;  %v114_v8 = vld [vmem:[#allocation5 + $0x1b0] sm:$0xff] }
  0x32   :  { %447 = vmatpush1.bf16.msra.mxu0 %v1098_v19  ;;  %490 = vmatpush1.bf16.msra.mxu1 %v1100_v20  ;;  %v88_v32 = vld [vmem:[#allocation5 + $0xe0] sm:$0xff]  ;;  %v89_v34 = vld [vmem:[#allocation5 + $0xe8] sm:$0xff]  ;;  %v111_v11 = vld [vmem:[#allocation5 + $0x198] sm:$0xff]  ;;  %v1103_v19 = vcombine.high %v110_v7, %v114_v8  ;;  %v1102_v23 = vcombine.low %v110_v7, %v114_v8 }
  0x33   :  { %448 = vmatprep.subr.bf16.mxu0 %v1091_v21  ;;  %491 = vmatprep.subr.bf16.mxu1 %v1093_v22  ;;  %v1075_v37 = vcombine.high %v84_v31, %v88_v32  ;;  %v1077_v38 = vcombine.high %v85_v33, %v89_v34  ;;  %v76_v39 = vld [vmem:[#allocation5 + $0x80] sm:$0xff]  ;;  %v77_v41 = vld [vmem:[#allocation5 + $0x88] sm:$0xff]  ;;  %v1074_v43 = vcombine.low %v84_v31, %v88_v32  ;;  %v115_v12 = vld [vmem:[#allocation5 + $0x1b8] sm:$0xff] }
  0x34   :  { %v80_v40 = vld [vmem:[#allocation5 + $0xa0] sm:$0xff]  ;;  %v81_v42 = vld [vmem:[#allocation5 + $0xa8] sm:$0xff]  ;;  %v1076_v44 = vcombine.low %v85_v33, %v89_v34  ;;  %v102_v16 = vld [vmem:[#allocation5 + $0x150] sm:$0xff]  ;;  %v1105_v22 = vcombine.high %v111_v11, %v115_v12  ;;  %v1104_v26 = vcombine.low %v111_v11, %v115_v12 }
  0x35   :  { %v1067_v45 = vcombine.high %v76_v39, %v80_v40  ;;  %v1069_v46 = vcombine.high %v77_v41, %v81_v42  ;;  %v68_v47 = vld [vmem:[#allocation5 + $0x40] sm:$0xff]  ;;  %v69_v49 = vld [vmem:[#allocation5 + $0x48] sm:$0xff]  ;;  %v1066_v51 = vcombine.low %v76_v39, %v80_v40  ;;  %v1068_v53 = vcombine.low %v77_v41, %v81_v42  ;;  %v106_v17 = vld [vmem:[#allocation5 + $0x170] sm:$0xff] }
  0x36   :  { %449 = vmatpush1.bf16.msra.mxu0 %v1090_v27  ;;  %492 = vmatpush1.bf16.msra.mxu1 %v1092_v28  ;;  %v72_v48 = vld [vmem:[#allocation5 + $0x60] sm:$0xff]  ;;  %v73_v50 = vld [vmem:[#allocation5 + $0x68] sm:$0xff]  ;;  %v103_v20 = vld [vmem:[#allocation5 + $0x158] sm:$0xff]  ;;  %v1095_v27 = vcombine.high %v102_v16, %v106_v17  ;;  %v1094_v31 = vcombine.low %v102_v16, %v106_v17 }
  0x37   :  { %450 = vmatprep.subr.bf16.mxu0 %v1083_v29  ;;  %493 = vmatprep.subr.bf16.mxu1 %v1085_v30  ;;  %v60_v52 = vld [vmem:[#allocation5] sm:$0xff]  ;;  %v1059_v54 = vcombine.high %v68_v47, %v72_v48  ;;  %v61_v56 = vld [vmem:[#allocation5 + $0x8] sm:$0xff]  ;;  %v1061_v58 = vcombine.high %v69_v49, %v73_v50  ;;  %v1058_v59 = vcombine.low %v68_v47, %v72_v48  ;;  %v107_v21 = vld [vmem:[#allocation5 + $0x178] sm:$0xff] }
  0x38   :  { %v64_v55 = vld [vmem:[#allocation5 + $0x20] sm:$0xff]  ;;  %v65_v57 = vld [vmem:[#allocation5 + $0x28] sm:$0xff]  ;;  %v1060_v62 = vcombine.low %v69_v49, %v73_v50  ;;  %v94_v24 = vld [vmem:[#allocation5 + $0x110] sm:$0xff]  ;;  %v1097_v30 = vcombine.high %v103_v20, %v107_v21  ;;  %v1096_v34 = vcombine.low %v103_v20, %v107_v21 }
  0x39   :  { %v1051_v63 = vcombine.high %v60_v52, %v64_v55  ;;  %v1053_v3 = vcombine.high %v61_v56, %v65_v57  ;;  %v1050_v6 = vcombine.low %v60_v52, %v64_v55  ;;  %v1052_v9 = vcombine.low %v61_v56, %v65_v57  ;;  %v98_v25 = vld [vmem:[#allocation5 + $0x130] sm:$0xff]  ;;  %v95_v28 = vld [vmem:[#allocation5 + $0x118] sm:$0xff]  ;;  %v1228_v16 = vld [vmem:[#allocation7 + $0x28] sm:$0xff]  }
  0x3a   :  { %451 = vmatpush1.bf16.msra.mxu0 %v1082_v35  ;;  %494 = vmatpush1.bf16.msra.mxu1 %v1084_v36  ;;  %v99_v29 = vld [vmem:[#allocation5 + $0x138] sm:$0xff]  ;;  %v86_v32 = vld [vmem:[#allocation5 + $0xd0] sm:$0xff]  ;;  %v1087_v35 = vcombine.high %v94_v24, %v98_v25  ;;  %v1086_v39 = vcombine.low %v94_v24, %v98_v25  ;;  %v1230_v17 = vld [vmem:[#allocation7 + $0x60] sm:$0xff]  }
  0x3b   :  { %452 = vmatprep.subr.bf16.mxu0 %v1075_v37  ;;  %495 = vmatprep.subr.bf16.mxu1 %v1077_v38  ;;  %v90_v33 = vld [vmem:[#allocation5 + $0xf0] sm:$0xff]  ;;  %v1089_v36 = vcombine.high %v95_v28, %v99_v29  ;;  %v87_v37 = vld [vmem:[#allocation5 + $0xd8] sm:$0xff]  ;;  %v1088_v40 = vcombine.low %v95_v28, %v99_v29  ;;  %v1233_v20 = vld [vmem:[#allocation7 + $0xa0] sm:$0xff]  }
  0x3c   :  { %v91_v38 = vld [vmem:[#allocation5 + $0xf8] sm:$0xff]  ;;  %v1079_v41 = vcombine.high %v86_v32, %v90_v33  ;;  %v78_v42 = vld [vmem:[#allocation5 + $0x90] sm:$0xff]  ;;  %v1242_v29 = vld [vmem:[#allocation7 + $0x48] sm:$0xff]  }
  0x3d   :  { %v1080_v47 = vcombine.low %v87_v37, %v91_v38  ;;  %v70_v50 = vld [vmem:[#allocation5 + $0x50] sm:$0xff]  ;;  %v71_v52 = vld [vmem:[#allocation5 + $0x58] sm:$0xff] }
  0x3e   :  { %453 = vmatpush1.bf16.msra.mxu0 %v1074_v43  ;;  %496 = vmatpush1.bf16.msra.mxu1 %v1076_v44  ;;  %v82_v43 = vld [vmem:[#allocation5 + $0xb0] sm:$0xff]  ;;  %v79_v44 = vld [vmem:[#allocation5 + $0x98] sm:$0xff] }
  0x3f   :  { %454 = vmatprep.subr.bf16.mxu0 %v1067_v45  ;;  %497 = vmatprep.subr.bf16.mxu1 %v1069_v46  ;;  %v83_v45 = vld [vmem:[#allocation5 + $0xb8] sm:$0xff]  ;;  %v1078_v46 = vcombine.low %v86_v32, %v90_v33  ;;  %v1071_v48 = vcombine.high %v78_v42, %v82_v43  ;;  %v1224_v11 = vld [vmem:[#allocation7 + $0x30] sm:$0xff]   ;;  %v1245_v32 = vld [vmem:[#allocation7 + $0x88] sm:$0xff]  }
  0x40   :  { %v1073_v49 = vcombine.high %v79_v44, %v83_v45  ;;  %v1072_v55 = vcombine.low %v79_v44, %v83_v45  ;;  %v63_v60 = vld [vmem:[#allocation5 + $0x18] sm:$0xff]  ;;  %v1225_v12 = vld [vmem:[#allocation7 + $0xb0] sm:$0xff]   ;;  %v1246_v33 = vld [vmem:[#allocation7 + $0x40] sm:$0xff]  }
  0x41   :  { %v67_v61 = vld [vmem:[#allocation5 + $0x38] sm:$0xff]  ;;  %v1238_v25 = vld [vmem:[#allocation7 + $0x50] sm:$0xff]  }
  0x42   :  { %455 = vmatpush1.bf16.msra.mxu0 %v1066_v51  ;;  %498 = vmatpush1.bf16.msra.mxu1 %v1068_v53  ;;  %v74_v51 = vld [vmem:[#allocation5 + $0x70] sm:$0xff]  ;;  %v75_v53 = vld [vmem:[#allocation5 + $0x78] sm:$0xff]  ;;  %v1057_v2 = vcombine.high %v63_v60, %v67_v61  ;;  %v1056_v4 = vcombine.low %v63_v60, %v67_v61 }
  0x43   :  { %456 = vmatprep.subr.bf16.mxu0 %v1059_v54  ;;  %499 = vmatprep.subr.bf16.mxu1 %v1061_v58  ;;  %v1070_v54 = vcombine.low %v78_v42, %v82_v43  ;;  %v1063_v56 = vcombine.high %v70_v50, %v74_v51  ;;  %v1065_v57 = vcombine.high %v71_v52, %v75_v53  ;;  %v62_v58 = vld [vmem:[#allocation5 + $0x10] sm:$0xff]  ;;  %v1218_v5 = vld [vmem:[#allocation7 + $0x78] sm:$0xff]  }
  0x44   :  { %v1220_v7 = vld [vmem:[#allocation7 + $0x38] sm:$0xff]   ;;  %v1241_v28 = vld [vmem:[#allocation7 + $0x90] sm:$0xff]  }
  0x45   :  { %v1221_v8 = vld [vmem:[#allocation7 + $0xb8] sm:$0xff]  }
  0x46   :  { %457 = vmatpush1.bf16.msra.mxu0 %v1058_v59  ;;  %500 = vmatpush1.bf16.msra.mxu1 %v1060_v62  ;;  %v66_v59 = vld [vmem:[#allocation5 + $0x30] sm:$0xff]  ;;  %v1062_v62 = vcombine.low %v70_v50, %v74_v51  ;;  %v1234_v21 = vld [vmem:[#allocation7 + $0x58] sm:$0xff]  }
  0x47   :  { %458 = vmatprep.subr.bf16.mxu0 %v1051_v63  ;;  %501 = vmatprep.subr.bf16.mxu1 %v1053_v3  ;;  %v1064_v63 = vcombine.low %v71_v52, %v75_v53  ;;  %v1055_v1 = vcombine.high %v62_v58, %v66_v59  ;;  %v1054_v3 = vcombine.low %v62_v58, %v66_v59  ;;  %v1237_v24 = vld [vmem:[#allocation7 + $0x98] sm:$0xff]  }
  0x4a   :  { %459 = vmatpush1.bf16.msra.mxu0 %v1050_v6  ;;  %502 = vmatpush1.bf16.msra.mxu1 %v1052_v9  ;;  %v1219_v6 = vld [vmem:[#allocation7 + $0xf8] sm:$0xff]   ;;  %v1222_v9 = vld [vmem:[#allocation7 + $0x70] sm:$0xff]  }
  0x4b   :  { %530 = vmatprep.subr.bf16.mxu0 %v1111_v10  ;;  %573 = vmatprep.subr.bf16.mxu1 %v1113_v13  ;;  %v1223_v10 = vld [vmem:[#allocation7 + $0xf0] sm:$0xff]   ;;  %v1226_v13 = vld [vmem:[#allocation7 + $0x68] sm:$0xff]  }
  0x4d   :  { %477 = vmatmul.mubr.bf16.vlgmr.msra.gmra.mxu0 %v1413_v14  ;;  %520 = vmatmul.mubr.bf16.vlgmr.msra.gmra.mxu1 %v1413_v14 }
  0x4e   :  { %531 = vmatpush1.bf16.msra.mxu0 %v1110_v15  ;;  %574 = vmatpush1.bf16.msra.mxu1 %v1112_v18  ;;  %v1227_v15 = vld [vmem:[#allocation7 + $0xe8] sm:$0xff]   ;;  %v1231_v18 = vld [vmem:[#allocation7 + $0xe0] sm:$0xff]  }
  0x4f   :  { %532 = vmatprep.subr.bf16.mxu0 %v1103_v19  ;;  %575 = vmatprep.subr.bf16.mxu1 %v1105_v22  ;;  %v1232_v19 = vld [vmem:[#allocation7 + $0x20] sm:$0xff]   ;;  %v1235_v22 = vld [vmem:[#allocation7 + $0xd8] sm:$0xff]  }
  0x50   :  { %562 = vmatprep.mubr.bf16.mxu0 %v1377_v0  ;;  %605 = vmatprep.mubr.bf16.mxu1 %v1377_v0  ;;  %v1081_v0 = vcombine.high %v87_v37, %v91_v38 }
  0x52   :  { %533 = vmatpush1.bf16.msra.mxu0 %v1102_v23  ;;  %576 = vmatpush1.bf16.msra.mxu1 %v1104_v26  ;;  %v1236_v23 = vld [vmem:[#allocation7 + $0x18] sm:$0xff]   ;;  %v1239_v26 = vld [vmem:[#allocation7 + $0xd0] sm:$0xff]  }
  0x53   :  { %534 = vmatprep.subr.bf16.mxu0 %v1095_v27  ;;  %577 = vmatprep.subr.bf16.mxu1 %v1097_v30  ;;  %v1240_v27 = vld [vmem:[#allocation7 + $0x10] sm:$0xff]   ;;  %v1243_v30 = vld [vmem:[#allocation7 + $0xc8] sm:$0xff]  }
  0x56   :  { %535 = vmatpush1.bf16.msra.mxu0 %v1094_v31  ;;  %578 = vmatpush1.bf16.msra.mxu1 %v1096_v34  ;;  %v1244_v31 = vld [vmem:[#allocation7 + $0x8] sm:$0xff]   ;;  %v1247_v34 = vld [vmem:[#allocation7 + $0xc0] sm:$0xff]  }
  0x57   :  { %536 = vmatprep.subr.bf16.mxu0 %v1087_v35  ;;  %579 = vmatprep.subr.bf16.mxu1 %v1089_v36  ;;  %v1248_v35 = vld [vmem:[#allocation7] sm:$0xff]  }
  0x58   :  { %v1249_v36 = vld [vmem:[#allocation7 + $0x80] sm:$0xff]  }
  0x5a   :  { %537 = vmatpush1.bf16.msra.mxu0 %v1086_v39  ;;  %580 = vmatpush1.bf16.msra.mxu1 %v1088_v40 }
  0x5b   :  { %538 = vmatprep.subr.bf16.mxu0 %v1079_v41  ;;  %581 = vmatprep.subr.bf16.mxu1 %v1081_v0 }
  0x5e   :  { %539 = vmatpush1.bf16.msra.mxu0 %v1078_v46  ;;  %582 = vmatpush1.bf16.msra.mxu1 %v1080_v47 }
  0x5f   :  { %540 = vmatprep.subr.bf16.mxu0 %v1071_v48  ;;  %583 = vmatprep.subr.bf16.mxu1 %v1073_v49 }
  0x62   :  { %541 = vmatpush1.bf16.msra.mxu0 %v1070_v54  ;;  %584 = vmatpush1.bf16.msra.mxu1 %v1072_v55 }
  0x63   :  { %542 = vmatprep.subr.bf16.mxu0 %v1063_v56  ;;  %585 = vmatprep.subr.bf16.mxu1 %v1065_v57 }
  0x66   :  { %543 = vmatpush1.bf16.msra.mxu0 %v1062_v62  ;;  %586 = vmatpush1.bf16.msra.mxu1 %v1064_v63 }
  0x67   :  { %544 = vmatprep.subr.bf16.mxu0 %v1055_v1  ;;  %587 = vmatprep.subr.bf16.mxu1 %v1057_v2 }
  0x6a   :  { %545 = vmatpush1.bf16.msra.mxu0 %v1054_v3  ;;  %588 = vmatpush1.bf16.msra.mxu1 %v1056_v4 }
  0x6b   :  { %1163 = vmatprep.subr.bf16.mxu0 %v1218_v5  ;;  %1185 = vmatprep.subr.bf16.mxu1 %v1219_v6 }
  0x6d   :  { %563 = vmatmul.mubr.bf16.vlgmr.msra.gmra.mxu0 %v1413_v14  ;;  %606 = vmatmul.mubr.bf16.vlgmr.msra.gmra.mxu1 %v1413_v14  ;;  %v1229_v14 = vld [vmem:[#allocation7 + $0xa8] sm:$0xff]  }
  0x6e   :  { %1164 = vmatpush3.bf16.msra.mxu0 %v1220_v7  ;;  %1186 = vmatpush3.bf16.msra.mxu1 %v1221_v8 }
  0x6f   :  { %1165 = vmatprep.subr.bf16.mxu0 %v1222_v9  ;;  %1187 = vmatprep.subr.bf16.mxu1 %v1223_v10 }
  0x72   :  { %1166 = vmatpush3.bf16.msra.mxu0 %v1224_v11  ;;  %1188 = vmatpush3.bf16.msra.mxu1 %v1225_v12 }
  0x73   :  { %1167 = vmatprep.subr.bf16.mxu0 %v1226_v13  ;;  %1189 = vmatprep.subr.bf16.mxu1 %v1227_v15 }
  0x76   :  { %1168 = vmatpush3.bf16.msra.mxu0 %v1228_v16  ;;  %1190 = vmatpush3.bf16.msra.mxu1 %v1229_v14 }
  0x77   :  { %1169 = vmatprep.subr.bf16.mxu0 %v1230_v17  ;;  %1191 = vmatprep.subr.bf16.mxu1 %v1231_v18 }
  0x7a   :  { %1170 = vmatpush3.bf16.msra.mxu0 %v1232_v19  ;;  %1192 = vmatpush3.bf16.msra.mxu1 %v1233_v20 }
  0x7b   :  { %1171 = vmatprep.subr.bf16.mxu0 %v1234_v21  ;;  %1193 = vmatprep.subr.bf16.mxu1 %v1235_v22 }
  0x7e   :  { %1172 = vmatpush3.bf16.msra.mxu0 %v1236_v23  ;;  %1194 = vmatpush3.bf16.msra.mxu1 %v1237_v24 }
  0x7f   :  { %1173 = vmatprep.subr.bf16.mxu0 %v1238_v25  ;;  %1195 = vmatprep.subr.bf16.mxu1 %v1239_v26 }
  0x82   :  { %1174 = vmatpush3.bf16.msra.mxu0 %v1240_v27  ;;  %1196 = vmatpush3.bf16.msra.mxu1 %v1241_v28 }
  0x83   :  { %1175 = vmatprep.subr.bf16.mxu0 %v1242_v29  ;;  %1197 = vmatprep.subr.bf16.mxu1 %v1243_v30 }
  0x86   :  { %1176 = vmatpush3.bf16.msra.mxu0 %v1244_v31  ;;  %1198 = vmatpush3.bf16.msra.mxu1 %v1245_v32 }
  0x87   :  { %1177 = vmatprep.subr.bf16.mxu0 %v1246_v33  ;;  %1199 = vmatprep.subr.bf16.mxu1 %v1247_v34 }
  0x8a   :  { %1178 = vmatpush3.bf16.msra.mxu0 %v1248_v35  ;;  %1200 = vmatpush3.bf16.msra.mxu1 %v1249_v36 }
 0x10d   :  { %v1421_v37 = vpop.f32.mrf.mxu0  ;;  %v1424_v39 = vpop.f32.mrf.mxu1 }
 0x10e   :  { %v1114_v38 = vmul.f32 -1.442695, %v1421_v37  ;;  %v1116_v40 = vmul.f32 -1.442695, %v1424_v39 }
 0x10f   :  { %v480_v41 = vpop.f32.mrf.mxu0  ;;  %v523_v42 = vpop.f32.mrf.mxu1 }
 0x110   :  { %1250 = vpow2.f32 %v1114_v38  ;;  %v1115_v0 = vmul.f32 -1.442695, %v480_v41  ;;  %v1117_v43 = vmul.f32 -1.442695, %v523_v42 }
 0x111   :  { %1252 = vpow2.f32 %v1116_v40  ;;  %v482_v44 = vpop.f32.mrf.mxu0  ;;  %v525_v46 = vpop.f32.mrf.mxu1 }
 0x112   :  { %1254 = vpow2.f32 %v1115_v0  ;;  %v1118_v45 = vmul.f32 -1.442695, %v482_v44  ;;  %v1120_v47 = vmul.f32 -1.442695, %v525_v46 }
 0x113   :  { %1256 = vpow2.f32 %v1117_v43  ;;  %v484_v48 = vpop.f32.mrf.mxu0  ;;  %v527_v50 = vpop.f32.mrf.mxu1 }
 0x114   :  { %1258 = vpow2.f32 %v1118_v45  ;;  %v1119_v49 = vmul.f32 -1.442695, %v484_v48  ;;  %v1121_v51 = vmul.f32 -1.442695, %v527_v50 }
 0x115   :  { %1260 = vpow2.f32 %v1120_v47 }
 0x116   :  { %1262 = vpow2.f32 %v1119_v49 }
 0x117   :  { %1264 = vpow2.f32 %v1121_v51 }
 0x11d   :  { %v1251_v52 = vpop.eup %1250 }
 0x11e   :  { %v1253_v53 = vpop.eup %1252  ;;  %v640_v54 = vadd.f32 1.0, %v1251_v52 }
 0x11f   :  { %v1255_v55 = vpop.eup %1254  ;;  %v642_v56 = vadd.f32 1.0, %v1253_v53 }
 0x120   :  { %v1257_v57 = vpop.eup %1256  ;;  %1266 = vrcp.f32 %v640_v54  ;;  %v641_v58 = vadd.f32 1.0, %v1255_v55 }
 0x121   :  { %v1259_v59 = vpop.eup %1258  ;;  %1268 = vrcp.f32 %v642_v56  ;;  %v643_v60 = vadd.f32 1.0, %v1257_v57 }
 0x122   :  { %v1261_v61 = vpop.eup %1260  ;;  %1270 = vrcp.f32 %v641_v58  ;;  %v644_v62 = vadd.f32 1.0, %v1259_v59 }
 0x123   :  { %v1263_v63 = vpop.eup %1262  ;;  %1272 = vrcp.f32 %v643_v60  ;;  %v646_v1 = vadd.f32 1.0, %v1261_v61 }
 0x124   :  { %v1265_v2 = vpop.eup %1264  ;;  %1274 = vrcp.f32 %v644_v62  ;;  %v645_v3 = vadd.f32 1.0, %v1263_v63 }
 0x125   :  { %1276 = vrcp.f32 %v646_v1  ;;  %v647_v4 = vadd.f32 1.0, %v1265_v2 }
 0x126   :  { %1278 = vrcp.f32 %v645_v3 }
 0x127   :  { %1280 = vrcp.f32 %v647_v4 }
 0x12d   :  { %v1267_v5 = vpop.eup %1266  ;;  %v564_v6 = vpop.f32.mrf.mxu0 }
 0x12e   :  { %v1269_v7 = vpop.eup %1268  ;;  %v607_v8 = vpop.f32.mrf.mxu1  ;;  %v664_v20 = vmul.f32 %v1267_v5, %v1421_v37 }
 0x12f   :  { %v1271_v9 = vpop.eup %1270  ;;  %v566_v10 = vpop.f32.mrf.mxu0  ;;  %v666_v24 = vmul.f32 %v1269_v7, %v1424_v39 }
 0x130   :  { %v1273_v11 = vpop.eup %1272  ;;  %v609_v12 = vpop.f32.mrf.mxu1  ;;  %v665_v14 = vmul.f32 %v1271_v9, %v480_v41  ;;  %v672_v33 = vmul.f32 %v664_v20, %v564_v6 }
 0x131   :  { %v1275_v13 = vpop.eup %1274  ;;  %v568_v15 = vpop.f32.mrf.mxu0  ;;  %v667_v21 = vmul.f32 %v1273_v11, %v523_v42  ;;  %v674_v36 = vmul.f32 %v666_v24, %v607_v8 }
 0x132   :  { %v1277_v16 = vpop.eup %1276  ;;  %v668_v17 = vmul.f32 %v1275_v13, %v482_v44  ;;  %v611_v18 = vpop.f32.mrf.mxu1  ;;  %v673_v29 = vmul.f32 %v665_v14, %v566_v10 }
 0x133   :  { %v1279_v19 = vpop.eup %1278  ;;  %v670_v22 = vmul.f32 %v1277_v16, %v525_v46  ;;  %v570_v28 = vpop.f32.mrf.mxu0  ;;  %v675_v34 = vmul.f32 %v667_v21, %v609_v12 }
 0x134   :  { %v1281_v23 = vpop.eup %1280  ;;  %v669_v25 = vmul.f32 %v1279_v19, %v484_v48  ;;  %v676_v27 = vmul.f32 %v668_v17, %v568_v15  ;;  %v613_v32 = vpop.f32.mrf.mxu1 }
 0x135   :  { %v671_v26 = vmul.f32 %v1281_v23, %v527_v50  ;;  %v678_v30 = vmul.f32 %v670_v22, %v611_v18 }
 0x136   :  { %v677_v31 = vmul.f32 %v669_v25, %v570_v28  ;;  %v680_v40 = vpack.c.bf16 %v676_v27, %v672_v33 }
 0x137   :  { %v679_v35 = vmul.f32 %v671_v26, %v613_v32  ;;  %v682_v41 = vpack.c.bf16 %v678_v30, %v674_v36 }
 0x138   :  { %v681_v38 = vpack.c.bf16 %v677_v31, %v673_v29 }
 0x139   :  { %v683_v37 = vpack.c.bf16 %v679_v35, %v675_v34 }
 0x13a   :  { %972 = vmatprep.mubr.bf16.mxu0 %v681_v38 }
 0x13b   :  { %1013 = vmatprep.mubr.bf16.mxu1 %v683_v37  ;;  %973 = vmatmul.mubr.bf16.vlgmr.msra.gmra.mxu0 %v680_v40 }
 0x13c   :  { %1014 = vmatmul.mubr.bf16.vlgmr.msra.gmra.mxu1 %v682_v41 }
 0x1fb   :  { %v1179_v39 = vpop.f32.mrf.mxu0 }
 0x1fc   :  { %v1201_v0 = vpop.f32.mrf.mxu1 }
 0x1fd   :  { %v1180_v42 = vpop.f32.mrf.mxu0 }
 0x1fe   :  { %v1202_v43 = vpop.f32.mrf.mxu1  ;;  %v1181_v46 = vadd.f32 %v1180_v42, %v1179_v39 }
 0x1ff   :  { %v1182_v44 = vpop.f32.mrf.mxu0  ;;  %v1203_v47 = vadd.f32 %v1202_v43, %v1201_v0 }
 0x200   :  { %v1204_v45 = vpop.f32.mrf.mxu1 }
 0x201   :  { %v1183_v48 = vpop.f32.mrf.mxu0  ;;  %v1016_v52 = vadd.f32 %v1203_v47, %v1181_v46 }
 0x202   :  { %v1184_v49 = vadd.f32 %v1183_v48, %v1182_v44  ;;  %v1205_v50 = vpop.f32.mrf.mxu1 }
 0x203   :  { %v1206_v51 = vadd.f32 %v1205_v50, %v1204_v45 }
 0x205   :  { %v1019_v53 = vadd.f32 %v1206_v51, %v1184_v49 }
 0x207   :  { %v1161_v54 = vpack.c.bf16 %v1019_v53, %v1016_v52 }
 0x209   :  { %1162 = vst [vmem:[#allocation8] sm:$0xff] %v1161_v54  }
 0x20a   :  { %1353 = shalt.err (!%p1350_p5)
}
 0x20b   :  { %1043 = dma.vmem_to_hbm [thread:$0]  %s1038_s2, 128, %s1438_s3, [#allocation4], %s1375_s28, %s1375_s28, %s1376_s29  }
 0x20c   :  { %1366 = dma.done.wait [#allocation4], 128  }
 0x20d   :  { %1367 = vsyncadd [#allocation4], 4294967168 }
 0x20e   :  { %1047 = vsyncpa [#allocation3], 1 }
 0x20f   :  { %1048 = vsyncpa [#allocation6], 1 }
 0x210   :  { %1049 = vsyncpa [#allocation4], 1 }

</bundles_post_ra>
